<compile_context>
chip_gen: v6e
topology: v6e:2x2x1
jax: 0.10.0
libtpu: 0.0.40
codegen_flags: <defaults>
</compile_context>

<pallas_src>
import jax
import jax.numpy as jnp
from jax import lax
from jax.experimental import pallas as pl
from jax.experimental.pallas import tpu as pltpu

_LANES = 128
_SUBLANES = 8


# ---------------------------------------------------------------------------
# Kernels
# ---------------------------------------------------------------------------
def _cross_mxu_kernel(x0_ref, xi_ref, m_ref, b_ref, o_ref):
    """Lane-folded path (fold > 1): segmented per-row dot as one MXU matmul.

    x0/xi/o: (TB, W) lane-dense with W = fold * D; m: (W, W) block-diagonal so
    (xi @ m)[r, l] = sum_k xi[r, (l // D) * D + k] * w[k]; b: (1, W) tiled bias.
    """
    x0 = x0_ref[...].astype(jnp.float32)
    xi = xi_ref[...].astype(jnp.float32)
    s = jnp.dot(xi, m_ref[...], preferred_element_type=jnp.float32,
                precision=lax.Precision.HIGHEST)          # (TB, W) segmented dot
    out = s * x0 + b_ref[...].astype(jnp.float32) + xi
    o_ref[...] = out.astype(o_ref.dtype)


def _cross_reduce_kernel(x0_ref, xi_ref, w_ref, b_ref, o_ref):
    """fold == 1 path: per-row dot on VPU (mul) + XLU (lane reduce), f32 acc."""
    x0 = x0_ref[...].astype(jnp.float32)
    xi = xi_ref[...].astype(jnp.float32)
    w = w_ref[...].astype(jnp.float32)                     # (1, W)
    s = jnp.sum(xi * w, axis=-1, keepdims=True)            # (TB, 1)
    out = s * x0 + b_ref[...].astype(jnp.float32) + xi
    o_ref[...] = out.astype(o_ref.dtype)


# ---------------------------------------------------------------------------
# Tiling / pallas_call wrapper
# ---------------------------------------------------------------------------
def _pick_block_rows(rows, width, itemsize):
    # ~1 MiB per (tb, width) block: ~85% of the HBM roofline is reached well
    # before that, while bigger blocks only reduce pipeline overlap, risk
    # spills, and collapse medium batches to 1-2 grid steps.
    mult = max(_SUBLANES, 32 // max(1, itemsize))   # 8 for f32, 16 for bf16
    target_block_bytes = 1 << 20
    tb = (target_block_bytes // (width * itemsize)) // mult * mult
    tb = max(mult, min(tb, 1024))
    # Keep >= 8 grid steps on large batches so double-buffering has work to
    # overlap and v7x's two TensorCores split the batch evenly.
    min_steps = 8
    if rows >= min_steps * mult and pl.cdiv(rows, tb) < min_steps:
        tb = max(mult, (rows // min_steps) // mult * mult)
    if tb >= rows:
        tb = rows                    # single full block (== full dim is legal)
    return tb


def _cross_pallas(x0k, xik, wk, bk, *, use_mxu):
    rows, width = x0k.shape
    out_dtype = x0k.dtype
    itemsize = jnp.dtype(out_dtype).itemsize
    tb = _pick_block_rows(rows, width, itemsize)
    grid = (pl.cdiv(rows, tb),)

    kernel = _cross_mxu_kernel if use_mxu else _cross_reduce_kernel
    w_block = (width, width) if use_mxu else (1, width)
    dot_flops = 2 * rows * width * (width if use_mxu else 1)
    cost = pl.CostEstimate(
        flops=dot_flops + 3 * rows * width,
        transcendentals=0,
        bytes_accessed=3 * rows * width * itemsize,
    )

    return pl.pallas_call(
        kernel,
        out_shape=jax.ShapeDtypeStruct((rows, width), out_dtype),
        grid_spec=pltpu.PrefetchScalarGridSpec(
            num_scalar_prefetch=0,
            grid=grid,
            in_specs=[
                pl.BlockSpec((tb, width), lambda i: (i, 0)),   # x0 (batch tiled)
                pl.BlockSpec((tb, width), lambda i: (i, 0)),   # xi (batch tiled)
                pl.BlockSpec(w_block, lambda i: (0, 0)),       # weight / M (resident)
                pl.BlockSpec((1, width), lambda i: (0, 0)),    # bias (resident)
            ],
            out_specs=pl.BlockSpec((tb, width), lambda i: (i, 0)),
        ),
        compiler_params=pltpu.CompilerParams(
            # Batch tiles are independent -> shard across TCs on v7x megacore.
            dimension_semantics=("parallel",),
        ),
        cost_estimate=cost,
    )(x0k, xik, wk, bk)


def cross_network_layer(x0, xi, weight, bias):
    """x0, xi: (B, D); weight: nn.Linear(D, 1).weight, i.e. (1, D) (or (D,));
    bias: (D,).  Returns (B, D) = (xi @ weight.T) * x0 + bias + xi."""
    B, D = x0.shape
    weight = jnp.asarray(weight).reshape(1, D)
    bias = jnp.asarray(bias).reshape(1, D)

    # Lane-density fix: for D < 128 with 128 % D == 0, pack fold = 128 // D
    # original rows per kernel row so every DMA / store is unmasked lane-dense.
    fold = _LANES // D if (D < _LANES and _LANES % D == 0) else 1
    if fold == 1:
        return _cross_pallas(x0, xi, weight, bias, use_mxu=False)

    width = fold * D
    b_bulk = (B // fold) * fold

    outs = []
    if b_bulk > 0:
        # Block-diagonal segmented-dot matrix for the MXU:
        #   M[m, l] = w[m % D] if m // D == l // D else 0.
        w_tiled = jnp.tile(weight.reshape(D).astype(jnp.float32), fold)   # (W,)
        seg = jnp.arange(width, dtype=jnp.int32) // D
        m_mat = jnp.where(seg[:, None] == seg[None, :], w_tiled[:, None], 0.0)
        b_tiled = jnp.tile(bias, (1, fold))                               # (1, W)

        x0b = x0[:b_bulk].reshape(b_bulk // fold, width)   # contiguous reshape
        xib = xi[:b_bulk].reshape(b_bulk // fold, width)
        ob = _cross_pallas(x0b, xib, m_mat, b_tiled, use_mxu=True)
        outs.append(ob.reshape(b_bulk, D))
    if b_bulk < B:
        # < fold leftover rows: tiny fold = 1 tail call instead of a full-array
        # jnp.pad of the inputs and an out[:B] slice of the output.
        outs.append(_cross_pallas(x0[b_bulk:], xi[b_bulk:], weight, bias,
                                  use_mxu=False))
    return outs[0] if len(outs) == 1 else jnp.concatenate(outs, axis=0)


# ---------------------------------------------------------------------------
# Reference + self-test
# ---------------------------------------------------------------------------
def reference(x0, xi, weight, bias):
    weight = weight.reshape(1, -1)
    return (xi @ weight.T) * x0 + bias + xi


def _check(B, D, key):
    k0, k1, kw = jax.random.split(key, 3)
    x0 = jax.random.normal(k0, (B, D), dtype=jnp.float32)
    xi = jax.random.normal(k1, (B, D), dtype=jnp.float32)
    bound = 1.0 / float(D) ** 0.5
    weight = jax.random.uniform(kw, (1, D), dtype=jnp.float32,
                                minval=-bound, maxval=bound)
    bias = jnp.zeros((D,), dtype=jnp.float32)

    out = jax.block_until_ready(cross_network_layer(x0, xi, weight, bias))
    ref = reference(x0, xi, weight, bias)
    assert out.shape == (B, D), (out.shape, B, D)
    assert jnp.allclose(out, ref, atol=1e-5, rtol=1e-5), f"mismatch B={B} D={D}"


if __name__ == "__main__":
    key = jax.random.PRNGKey(0)
    k_a, k_b, k_c = jax.random.split(key, 3)

    # Main small case (batch=8, input_dim=32): lane-folded MXU path (fold=4).
    _check(8, 32, k_a)
    # Batch not divisible by fold: folded bulk + tiny fold=1 tail (no pad/slice).
    _check(10, 32, k_b)
    # Feature dim already lane-dense: plain fold=1 VPU/XLU-reduce path.
    _check(16, 256, k_c)

    print("KERNEL_OK")
</pallas_src>

<mosaic_0001>
module attributes {stable_mosaic.version = 11 : i64} {
  func.func @_cross_mxu_kernel(%arg0: i32, %arg1: memref<2x128xf32, #tpu.memory_space<vmem>>, %arg2: memref<2x128xf32, #tpu.memory_space<vmem>>, %arg3: memref<128x128xf32, #tpu.memory_space<vmem>>, %arg4: memref<1x128xf32, #tpu.memory_space<vmem>>, %arg5: memref<2x128xf32, #tpu.memory_space<vmem>>) attributes {dimension_semantics = [#tpu.dimension_semantics<parallel>], iteration_bounds = array<i64: 1>, scalar_prefetch = 0 : i64, scratch_operands = 0 : i64, tpu.core_type = #tpu.core_type<tc>, window_params = [{transform_indices = @transform_0, window_bounds = array<i64: 2, 128>}, {transform_indices = @transform_1, window_bounds = array<i64: 2, 128>}, {pipeline_mode = #tpu.pipeline_mode<synchronous>, transform_indices = @transform_2, window_bounds = array<i64: 128, 128>}, {pipeline_mode = #tpu.pipeline_mode<synchronous>, transform_indices = @transform_3, window_bounds = array<i64: 1, 128>}, {transform_indices = @transform_4, window_bounds = array<i64: 2, 128>}]} {
    %c0 = arith.constant 0 : index
    %c0_0 = arith.constant 0 : index
    %0 = vector.load %arg1[%c0, %c0_0] : memref<2x128xf32, #tpu.memory_space<vmem>>, vector<2x128xf32>
    %c0_1 = arith.constant 0 : index
    %c0_2 = arith.constant 0 : index
    %1 = vector.load %arg2[%c0_1, %c0_2] : memref<2x128xf32, #tpu.memory_space<vmem>>, vector<2x128xf32>
    %c0_3 = arith.constant 0 : index
    %c0_4 = arith.constant 0 : index
    %2 = vector.load %arg3[%c0_3, %c0_4] : memref<128x128xf32, #tpu.memory_space<vmem>>, vector<128x128xf32>
    %cst = arith.constant dense<0.000000e+00> : vector<2x128xf32>
    %3 = tpu.matmul %1, %2, %cst {dimension_numbers = #tpu.dot_dimension_numbers<[1], [0], [0], [1], [0, 0, 1, 1], [], []>, precision = #tpu.contract_precision<fp32>} : vector<2x128xf32>, vector<128x128xf32>, vector<2x128xf32> -> vector<2x128xf32>
    %4 = arith.mulf %3, %0 : vector<2x128xf32>
    %c0_5 = arith.constant 0 : index
    %c0_6 = arith.constant 0 : index
    %5 = vector.load %arg4[%c0_5, %c0_6] : memref<1x128xf32, #tpu.memory_space<vmem>>, vector<1x128xf32>
    %6 = vector.broadcast %5 : vector<1x128xf32> to vector<2x128xf32>
    %7 = arith.addf %4, %6 : vector<2x128xf32>
    %8 = arith.addf %7, %1 : vector<2x128xf32>
    %c0_7 = arith.constant 0 : index
    %c0_8 = arith.constant 0 : index
    %9 = vector.load %arg5[%c0_7, %c0_8] : memref<2x128xf32, #tpu.memory_space<vmem>>, vector<2x128xf32>
    tpu.vector_store %arg5[%c0_7, %c0_8], %8 {strides = array<i32>} : memref<2x128xf32, #tpu.memory_space<vmem>>, vector<2x128xf32>,
    return
  }
  func.func @transform_0(%arg0: i32) -> (i32, i32) {
    %c0_i32 = arith.constant 0 : i32
    %c0_i32_0 = arith.constant 0 : i32
    return %arg0, %c0_i32 : i32, i32
  }
  func.func @transform_1(%arg0: i32) -> (i32, i32) {
    %c0_i32 = arith.constant 0 : i32
    %c0_i32_0 = arith.constant 0 : i32
    return %arg0, %c0_i32 : i32, i32
  }
  func.func @transform_2(%arg0: i32) -> (i32, i32) {
    %c0_i32 = arith.constant 0 : i32
    %c0_i32_0 = arith.constant 0 : i32
    %c0_i32_1 = arith.constant 0 : i32
    return %c0_i32, %c0_i32_0 : i32, i32
  }
  func.func @transform_3(%arg0: i32) -> (i32, i32) {
    %c0_i32 = arith.constant 0 : i32
    %c0_i32_0 = arith.constant 0 : i32
    %c0_i32_1 = arith.constant 0 : i32
    return %c0_i32, %c0_i32_0 : i32, i32
  }
  func.func @transform_4(%arg0: i32) -> (i32, i32) {
    %c0_i32 = arith.constant 0 : i32
    %c0_i32_0 = arith.constant 0 : i32
    return %arg0, %c0_i32 : i32, i32
  }
}

</mosaic_0001>

<bundles_post_ra>
// kernel: tpu_custom_call.1
= control target key start
LH: loop header
LB: loop body
LE: loop exit
PB: predicated region body
PF: predicated region fallthrough
CT: control target
= control target key end

     0   :  { %9 = vsyncpa [#allocation3], 0  ;;  %s1564_s0 = inlined_call_operand.hbm [shape: f32[2,128], index: 0, kind: input, shape index: {}]   ;;  %s1565_s1 = inlined_call_operand.hbm [shape: f32[2,128], index: 1, kind: input, shape index: {}]   ;;  %s1566_s2 = inlined_call_operand.hbm [shape: f32[128,128], index: 2, kind: input, shape index: {}]   ;;  %s1567_s3 = inlined_call_operand.vmem [shape: f32[1,128], index: 3, kind: input, shape index: {}]   ;;  %s1568_s4 = inlined_call_operand.hbm [shape: f32[2,128], index: 4, kind: output, shape index: {}]  }
   0x1   :  { %10 = vsyncpa [#allocation6], 0 }
   0x2   :  { %11 = vsyncpa [#allocation4], 0  ;;  %s1148_s15 = smov [#allocation5]   ;;  %s1149_s17 = smov [#allocation2]  }
   0x3   :  { %s28_s16 = sshll.u32 %s1148_s15, 4  ;;  %s18_s18 = sshll.u32 %s1149_s17, 4  ;;  %s29_s16 = int_to_ptr.vmem [resolvable:$true] %s28_s16  ;;  %s19_s18 = int_to_ptr.vmem [resolvable:$true] %s18_s18 }
   0x4   :  { %s1070_s19 = scalar_lea.vmem %s29_s16, 32  ;;  %p1075_p1 = scmp.lt.s32.totalorder %s29_s16, %s29_s16 }
   0x5   :  { %p1071_p0 = scmp.ne.s32.totalorder %s29_s16, %s1070_s19  ;;  %p1076_p2 = scmp.lt.s32.totalorder %s1070_s19, %s1070_s19 }
   0x7   :  { %p1077_p3 = por %p1076_p2, %p1075_p1 }
   0x9   :  { %p1078_p4 = pnand %p1077_p3, %p1071_p0 }
   0xb   :  { %1081 = shalt.err (!%p1078_p4)
}
   0xc   :  { %31 = dma.hbm_to_vmem [thread:$0]  %s1565_s1, 32, %s29_s16, [#allocation6]  }
   0xd   :  { %s1090_s22 = scalar_lea.vmem %s19_s18, 32  ;;  %p1095_p6 = scmp.lt.s32.totalorder %s19_s18, %s19_s18 }
   0xe   :  { %p1091_p5 = scmp.ne.s32.totalorder %s19_s18, %s1090_s22  ;;  %p1096_p7 = scmp.lt.s32.totalorder %s1090_s22, %s1090_s22 }
  0x10   :  { %p1097_p8 = por %p1096_p7, %p1095_p6 }
  0x12   :  { %p1098_p9 = pnand %p1097_p8, %p1091_p5 }
  0x14   :  { %1101 = shalt.err (!%p1098_p9)
}
  0x15   :  { %21 = dma.hbm_to_vmem [thread:$0]  %s1564_s0, 32, %s19_s18, [#allocation3]  }
  0x16   :  { %s1150_s25 = smov [#allocation7]  }
  0x17   :  { %s37_s26 = sshll.u32 %s1150_s25, 4  ;;  %s38_s26 = int_to_ptr.vmem [resolvable:$true] %s37_s26 }
  0x18   :  { %s1110_s27 = scalar_lea.vmem %s38_s26, 2048  ;;  %p1115_p11 = scmp.lt.s32.totalorder %s38_s26, %s38_s26 }
  0x19   :  { %p1111_p10 = scmp.ne.s32.totalorder %s38_s26, %s1110_s27  ;;  %p1116_p12 = scmp.lt.s32.totalorder %s1110_s27, %s1110_s27 }
  0x1b   :  { %p1117_p13 = por %p1116_p12, %p1115_p11 }
  0x1d   :  { %p1118_p0 = pnand %p1117_p13, %p1111_p10 }
  0x1f   :  { %1121 = shalt.err (!%p1118_p0)
}
  0x20   :  { %s1151_s1 = smov 128   ;;  %s1152_s28 = smov 8  }
  0x21   :  { %43 = dma.hbm_to_vmem [thread:$0]  %s1566_s2, 2048, %s38_s26, [#allocation6], %s1151_s1, %s1151_s1, %s1152_s28  }
  0x22   :  { %1142 = dma.done.wait [#allocation3], 32  }
  0x23   :  { %1143 = vsyncadd [#allocation3], 4294967264 }
  0x24   :  { %1144 = dma.done.wait [#allocation6], 2080  }
  0x25   :  { %1145 = vsyncadd [#allocation6], 4294965216  ;;  %v1153_v0 = vmov 0.0   ;;  %vm1154_vm0 = vmmov 0   ;;  %v72_v1 = vld [vmem:[#allocation7 + $0x78] sm:$0xff]  ;;  %v71_v2 = vld [vmem:[#allocation7 + $0x70] sm:$0xff] }
  0x26   :  { %844 = vmatprep.subr.mxu0 %v1153_v0  ;;  %879 = vmatprep.subr.mxu1 %v1153_v0  ;;  %v70_v3 = vld [vmem:[#allocation7 + $0x68] sm:$0xff]  ;;  %v1196_v4 = vand.u32 4294901760, %v72_v1  ;;  %v1198_v5 = vand.u32 4294901760, %v71_v2  ;;  %v69_v7 = vld [vmem:[#allocation7 + $0x60] sm:$0xff]  ;;  %v68_v8 = vld [vmem:[#allocation7 + $0x58] sm:$0xff]  ;;  %s1155_s5 = smov [#allocation8]  }
  0x27   :  { %876 = vmatprep.mubr.msk.f32.mxu0 %vm1154_vm0, %v1153_v0  ;;  %911 = vmatprep.mubr.msk.f32.mxu1 %vm1154_vm0, %v1153_v0  ;;  %v1200_v6 = vand.u32 4294901760, %v70_v3  ;;  %v67_v9 = vld [vmem:[#allocation7 + $0x50] sm:$0xff]  ;;  %v1202_v10 = vand.u32 4294901760, %v69_v7  ;;  %v1204_v11 = vand.u32 4294901760, %v68_v8  ;;  %v66_v13 = vld [vmem:[#allocation7 + $0x48] sm:$0xff]  ;;  %v65_v14 = vld [vmem:[#allocation7 + $0x40] sm:$0xff] }
  0x28   :  { %v1206_v12 = vand.u32 4294901760, %v67_v9  ;;  %845 = vmatpush3.msra.mxu0 %v1196_v4  ;;  %v1210_v15 = vsub.f32 %v72_v1, %v1196_v4  ;;  %v1213_v16 = vsub.f32 %v71_v2, %v1198_v5  ;;  %v1215_v17 = vand.u32 4294901760, %v66_v13  ;;  %v64_v19 = vld [vmem:[#allocation7 + $0x38] sm:$0xff]  ;;  %v63_v26 = vld [vmem:[#allocation7 + $0x30] sm:$0xff]  ;;  %v62_v36 = vld [vmem:[#allocation7 + $0x28] sm:$0xff]  ;;  %s731_s6 = sshll.u32 %s1155_s5, 4  ;;  %s732_s6 = int_to_ptr.vmem [resolvable:$true] %s731_s6 }
  0x29   :  { %v1218_v18 = vsub.f32 %v70_v3, %v1200_v6  ;;  %846 = vmatprep.subr.mxu0 %v1153_v0  ;;  %v1222_v20 = vsub.f32 %v69_v7, %v1202_v10  ;;  %v1225_v21 = vsub.f32 %v68_v8, %v1204_v11  ;;  %v1231_v25 = vand.u32 4294901760, %v65_v14  ;;  %v61_v41 = vld [vmem:[#allocation7 + $0x20] sm:$0xff]  ;;  %v60_v49 = vld [vmem:[#allocation7 + $0x18] sm:$0xff]  ;;  %v59_v54 = vld [vmem:[#allocation7 + $0x10] sm:$0xff]  ;;  %s1122_s7 = scalar_lea.vmem %s732_s6, 32  ;;  %p1127_p2 = scmp.lt.s32.totalorder %s732_s6, %s732_s6 }
  0x2a   :  { %847 = vmatpush3.msra.mxu0 %v1198_v5  ;;  %v167_v22 = vand.u32 4294901760, %v1210_v15  ;;  %v174_v23 = vand.u32 4294901760, %v1213_v16  ;;  %v1235_v28 = vand.u32 4294901760, %v64_v19  ;;  %v1239_v30 = vsub.f32 %v67_v9, %v1206_v12  ;;  %v1280_v50 = vld [vmem:[#allocation5] sm:$0x3]  ;;  %v58_v60 = vld [vmem:[#allocation7 + $0x8] sm:$0xff]  ;;  %p1123_p1 = scmp.ne.s32.totalorder %s732_s6, %s1122_s7  ;;  %p1128_p3 = scmp.lt.s32.totalorder %s1122_s7, %s1122_s7 }
  0x2b   :  { %v181_v24 = vand.u32 4294901760, %v1218_v18  ;;  %848 = vmatprep.subr.mxu0 %v1153_v0  ;;  %v188_v27 = vand.u32 4294901760, %v1222_v20  ;;  %v195_v29 = vand.u32 4294901760, %v1225_v21  ;;  %v1252_v34 = vsub.f32 %v66_v13, %v1215_v17  ;;  %v57_v7 = vld [vmem:[#allocation7] sm:$0xff] }
  0x2c   :  { %849 = vmatpush3.msra.mxu0 %v1200_v6  ;;  %v168_v31 = vsub.f32 %v1210_v15, %v167_v22  ;;  %v175_v32 = vsub.f32 %v1213_v16, %v174_v23  ;;  %v1255_v35 = vand.u32 4294901760, %v63_v26  ;;  %v202_v40 = vand.u32 4294901760, %v1239_v30  ;;  %p1129_p4 = por %p1128_p3, %p1127_p2 }
  0x2d   :  { %v182_v33 = vsub.f32 %v1218_v18, %v181_v24  ;;  %850 = vmatprep.subr.mxu0 %v1153_v0  ;;  %v189_v39 = vsub.f32 %v1222_v20, %v188_v27  ;;  %v196_v42 = vsub.f32 %v1225_v21, %v195_v29  ;;  %v1267_v43 = vsub.f32 %v65_v14, %v1231_v25 }
  0x2e   :  { %851 = vmatpush3.msra.mxu0 %v1202_v10  ;;  %v169_v37 = vand.u32 4294901760, %v168_v31  ;;  %v176_v38 = vand.u32 4294901760, %v175_v32  ;;  %v1270_v45 = vand.u32 4294901760, %v62_v36  ;;  %v209_v46 = vand.u32 4294901760, %v1252_v34  ;;  %p1130_p5 = pnand %p1129_p4, %p1123_p1 }
  0x2f   :  { %852 = vmatprep.subr.mxu0 %v1153_v0  ;;  %v183_v44 = vand.u32 4294901760, %v182_v33  ;;  %v1274_v47 = vsub.f32 %v64_v19, %v1235_v28  ;;  %v1278_v48 = vand.u32 4294901760, %v61_v41  ;;  %v190_v51 = vand.u32 4294901760, %v189_v39 }
  0x30   :  { %853 = vmatpush3.msra.mxu0 %v1204_v11  ;;  %880 = vmatpush3.msra.mxu1 %v169_v37  ;;  %v203_v52 = vsub.f32 %v1239_v30, %v202_v40  ;;  %v216_v53 = vand.u32 4294901760, %v1267_v43  ;;  %v1288_v55 = vsub.f32 %v63_v26, %v1255_v35  ;;  %v197_v56 = vand.u32 4294901760, %v196_v42 }
  0x31   :  { %854 = vmatprep.subr.mxu0 %v1153_v0  ;;  %881 = vmatprep.subr.mxu1 %v1153_v0  ;;  %v223_v57 = vand.u32 4294901760, %v1274_v47  ;;  %v210_v58 = vsub.f32 %v1252_v34, %v209_v46  ;;  %v1297_v59 = vand.u32 4294901760, %v60_v49  ;;  %v1300_v61 = vsub.f32 %v62_v36, %v1270_v45 }
  0x32   :  { %855 = vmatpush3.msra.mxu0 %v1206_v12  ;;  %882 = vmatpush3.msra.mxu1 %v176_v38  ;;  %v1303_v62 = vand.u32 4294901760, %v1280_v50  ;;  %v1307_v63 = vand.u32 4294901760, %v59_v54  ;;  %v204_v1 = vand.u32 4294901760, %v203_v52  ;;  %v217_v2 = vsub.f32 %v1267_v43, %v216_v53 }
  0x33   :  { %856 = vmatprep.subr.mxu0 %v1153_v0  ;;  %883 = vmatprep.subr.mxu1 %v1153_v0  ;;  %v230_v3 = vand.u32 4294901760, %v1288_v55  ;;  %v1315_v8 = vsub.f32 %v61_v41, %v1278_v48  ;;  %v224_v9 = vsub.f32 %v1274_v47, %v223_v57  ;;  %v1322_v13 = vand.u32 4294901760, %v58_v60 }
  0x34   :  { %857 = vmatpush3.msra.mxu0 %v1215_v17  ;;  %884 = vmatpush3.msra.mxu1 %v183_v44  ;;  %v211_v14 = vand.u32 4294901760, %v210_v58  ;;  %v237_v19 = vand.u32 4294901760, %v1300_v61  ;;  %v1328_v26 = vsub.f32 %v1280_v50, %v1303_v62  ;;  %v1331_v31 = vsub.f32 %v60_v49, %v1297_v59 }
  0x35   :  { %858 = vmatprep.subr.mxu0 %v1153_v0  ;;  %885 = vmatprep.subr.mxu1 %v1153_v0  ;;  %v1335_v32 = vand.u32 4294901760, %v57_v7  ;;  %v218_v33 = vand.u32 4294901760, %v217_v2  ;;  %v231_v36 = vsub.f32 %v1288_v55, %v230_v3  ;;  %v244_v37 = vand.u32 4294901760, %v1315_v8 }
  0x36   :  { %859 = vmatpush3.msra.mxu0 %v1231_v25  ;;  %886 = vmatpush3.msra.mxu1 %v190_v51  ;;  %v1343_v38 = vsub.f32 %v59_v54, %v1307_v63  ;;  %v225_v39 = vand.u32 4294901760, %v224_v9  ;;  %v238_v41 = vsub.f32 %v1300_v61, %v237_v19  ;;  %v156_v42 = vand.u32 4294901760, %v1328_v26 }
  0x37   :  { %860 = vmatprep.subr.mxu0 %v1153_v0  ;;  %887 = vmatprep.subr.mxu1 %v1153_v0  ;;  %v251_v44 = vand.u32 4294901760, %v1331_v31  ;;  %v1354_v49 = vsub.f32 %v58_v60, %v1322_v13  ;;  %v232_v51 = vand.u32 4294901760, %v231_v36  ;;  %v245_v52 = vsub.f32 %v1315_v8, %v244_v37 }
  0x38   :  { %861 = vmatpush3.msra.mxu0 %v1235_v28  ;;  %888 = vmatpush3.msra.mxu1 %v197_v56  ;;  %v258_v54 = vand.u32 4294901760, %v1343_v38  ;;  %v1364_v56 = vsub.f32 %v57_v7, %v1335_v32  ;;  %v239_v58 = vand.u32 4294901760, %v238_v41  ;;  %v157_v60 = vsub.f32 %v1328_v26, %v156_v42 }
  0x39   :  { %862 = vmatprep.subr.mxu0 %v1153_v0  ;;  %889 = vmatprep.subr.mxu1 %v1153_v0  ;;  %v265_v2 = vand.u32 4294901760, %v1354_v49  ;;  %v246_v7 = vand.u32 4294901760, %v245_v52 }
  0x3a   :  { %863 = vmatpush3.msra.mxu0 %v1255_v35  ;;  %890 = vmatpush3.msra.mxu1 %v204_v1  ;;  %v252_v1 = vsub.f32 %v1331_v31, %v251_v44  ;;  %v259_v9 = vsub.f32 %v1343_v38, %v258_v54 }
  0x3b   :  { %864 = vmatprep.subr.mxu0 %v1153_v0  ;;  %891 = vmatprep.subr.mxu1 %v1153_v0 }
  0x3c   :  { %865 = vmatpush3.msra.mxu0 %v1270_v45  ;;  %892 = vmatpush3.msra.mxu1 %v211_v14  ;;  %v272_v14 = vand.u32 4294901760, %v1364_v56  ;;  %v253_v36 = vand.u32 4294901760, %v252_v1  ;;  %v260_v41 = vand.u32 4294901760, %v259_v9 }
  0x3d   :  { %866 = vmatprep.subr.mxu0 %v1153_v0  ;;  %893 = vmatprep.subr.mxu1 %v1153_v0 }
  0x3e   :  { %867 = vmatpush3.msra.mxu0 %v1278_v48  ;;  %894 = vmatpush3.msra.mxu1 %v218_v33  ;;  %v158_v33 = vand.u32 4294901760, %v157_v60 }
  0x3f   :  { %868 = vmatprep.subr.mxu0 %v1153_v0  ;;  %895 = vmatprep.subr.mxu1 %v1153_v0 }
  0x40   :  { %869 = vmatpush3.msra.mxu0 %v1297_v59  ;;  %896 = vmatpush3.msra.mxu1 %v225_v39  ;;  %v266_v39 = vsub.f32 %v1354_v49, %v265_v2 }
  0x41   :  { %870 = vmatprep.subr.mxu0 %v1153_v0  ;;  %897 = vmatprep.subr.mxu1 %v1153_v0 }
  0x42   :  { %871 = vmatpush3.msra.mxu0 %v1307_v63  ;;  %898 = vmatpush3.msra.mxu1 %v232_v51  ;;  %v273_v51 = vsub.f32 %v1364_v56, %v272_v14  ;;  %v267_v52 = vand.u32 4294901760, %v266_v39 }
  0x43   :  { %872 = vmatprep.subr.mxu0 %v1153_v0  ;;  %899 = vmatprep.subr.mxu1 %v1153_v0 }
  0x44   :  { %873 = vmatpush3.msra.mxu0 %v1322_v13  ;;  %900 = vmatpush3.msra.mxu1 %v239_v58  ;;  %v274_v58 = vand.u32 4294901760, %v273_v51 }
  0x45   :  { %874 = vmatprep.subr.mxu0 %v1153_v0  ;;  %901 = vmatprep.subr.mxu1 %v1153_v0 }
  0x46   :  { %875 = vmatpush3.msra.mxu0 %v1335_v32  ;;  %902 = vmatpush3.msra.mxu1 %v246_v7 }
  0x47   :  { %903 = vmatprep.subr.mxu1 %v1153_v0  ;;  %914 = vmatprep.subr.mxu0 %v1153_v0 }
  0x48   :  { %877 = vmatmul.mubr.f32.vlgmr.msra.gmra.mxu0 %v158_v33  ;;  %904 = vmatpush3.msra.mxu1 %v253_v36 }
  0x49   :  { %915 = vmatpush3.msra.mxu0 %v1210_v15  ;;  %905 = vmatprep.subr.mxu1 %v1153_v0 }
  0x4a   :  { %916 = vmatprep.subr.mxu0 %v1153_v0  ;;  %906 = vmatpush3.msra.mxu1 %v260_v41 }
  0x4b   :  { %917 = vmatpush3.msra.mxu0 %v1213_v16  ;;  %907 = vmatprep.subr.mxu1 %v1153_v0 }
  0x4c   :  { %918 = vmatprep.subr.mxu0 %v1153_v0  ;;  %908 = vmatpush3.msra.mxu1 %v267_v52 }
  0x4d   :  { %919 = vmatpush3.msra.mxu0 %v1218_v18  ;;  %909 = vmatprep.subr.mxu1 %v1153_v0 }
  0x4e   :  { %920 = vmatprep.subr.mxu0 %v1153_v0  ;;  %910 = vmatpush3.msra.mxu1 %v274_v58 }
  0x4f   :  { %921 = vmatpush3.msra.mxu0 %v1222_v20  ;;  %912 = vmatmul.mubr.f32.vlgmr.msra.gmra.mxu1 %v1303_v62 }
  0x50   :  { %922 = vmatprep.subr.mxu0 %v1153_v0  ;;  %949 = vmatprep.subr.mxu1 %v1153_v0 }
  0x51   :  { %923 = vmatpush3.msra.mxu0 %v1225_v21  ;;  %950 = vmatpush3.msra.mxu1 %v1196_v4 }
  0x52   :  { %924 = vmatprep.subr.mxu0 %v1153_v0  ;;  %951 = vmatprep.subr.mxu1 %v1153_v0 }
  0x53   :  { %925 = vmatpush3.msra.mxu0 %v1239_v30  ;;  %952 = vmatpush3.msra.mxu1 %v1198_v5 }
  0x54   :  { %926 = vmatprep.subr.mxu0 %v1153_v0  ;;  %953 = vmatprep.subr.mxu1 %v1153_v0 }
  0x55   :  { %927 = vmatpush3.msra.mxu0 %v1252_v34  ;;  %954 = vmatpush3.msra.mxu1 %v1200_v6 }
  0x56   :  { %928 = vmatprep.subr.mxu0 %v1153_v0  ;;  %955 = vmatprep.subr.mxu1 %v1153_v0 }
  0x57   :  { %929 = vmatpush3.msra.mxu0 %v1267_v43  ;;  %956 = vmatpush3.msra.mxu1 %v1202_v10 }
  0x58   :  { %930 = vmatprep.subr.mxu0 %v1153_v0  ;;  %957 = vmatprep.subr.mxu1 %v1153_v0 }
  0x59   :  { %931 = vmatpush3.msra.mxu0 %v1274_v47  ;;  %958 = vmatpush3.msra.mxu1 %v1204_v11 }
  0x5a   :  { %932 = vmatprep.subr.mxu0 %v1153_v0  ;;  %959 = vmatprep.subr.mxu1 %v1153_v0 }
  0x5b   :  { %933 = vmatpush3.msra.mxu0 %v1288_v55  ;;  %960 = vmatpush3.msra.mxu1 %v1206_v12 }
  0x5c   :  { %934 = vmatprep.subr.mxu0 %v1153_v0  ;;  %961 = vmatprep.subr.mxu1 %v1153_v0 }
  0x5d   :  { %935 = vmatpush3.msra.mxu0 %v1300_v61  ;;  %962 = vmatpush3.msra.mxu1 %v1215_v17 }
  0x5e   :  { %936 = vmatprep.subr.mxu0 %v1153_v0  ;;  %963 = vmatprep.subr.mxu1 %v1153_v0 }
  0x5f   :  { %937 = vmatpush3.msra.mxu0 %v1315_v8  ;;  %964 = vmatpush3.msra.mxu1 %v1231_v25 }
  0x60   :  { %938 = vmatprep.subr.mxu0 %v1153_v0  ;;  %965 = vmatprep.subr.mxu1 %v1153_v0 }
  0x61   :  { %939 = vmatpush3.msra.mxu0 %v1331_v31  ;;  %966 = vmatpush3.msra.mxu1 %v1235_v28 }
  0x62   :  { %940 = vmatprep.subr.mxu0 %v1153_v0  ;;  %967 = vmatprep.subr.mxu1 %v1153_v0 }
  0x63   :  { %941 = vmatpush3.msra.mxu0 %v1343_v38  ;;  %968 = vmatpush3.msra.mxu1 %v1255_v35 }
  0x64   :  { %942 = vmatprep.subr.mxu0 %v1153_v0  ;;  %969 = vmatprep.subr.mxu1 %v1153_v0 }
  0x65   :  { %943 = vmatpush3.msra.mxu0 %v1354_v49  ;;  %970 = vmatpush3.msra.mxu1 %v1270_v45 }
  0x66   :  { %944 = vmatprep.subr.mxu0 %v1153_v0  ;;  %971 = vmatprep.subr.mxu1 %v1153_v0 }
  0x67   :  { %945 = vmatpush3.msra.mxu0 %v1364_v56  ;;  %946 = vmatprep.mubr.msk.f32.mxu0 %vm1154_vm0, %v1153_v0 }
  0x68   :  { %972 = vmatpush3.msra.mxu1 %v1278_v48  ;;  %947 = vmatmul.mubr.f32.vlgmr.msra.gmra.mxu0 %v1328_v26 }
  0x69   :  { %973 = vmatprep.subr.mxu1 %v1153_v0  ;;  %984 = vmatprep.subr.mxu0 %v1153_v0 }
  0x6a   :  { %974 = vmatpush3.msra.mxu1 %v1297_v59  ;;  %985 = vmatpush3.msra.mxu0 %v167_v22 }
  0x6b   :  { %975 = vmatprep.subr.mxu1 %v1153_v0  ;;  %986 = vmatprep.subr.mxu0 %v1153_v0 }
  0x6c   :  { %976 = vmatpush3.msra.mxu1 %v1307_v63  ;;  %987 = vmatpush3.msra.mxu0 %v174_v23 }
  0x6d   :  { %977 = vmatprep.subr.mxu1 %v1153_v0  ;;  %988 = vmatprep.subr.mxu0 %v1153_v0 }
  0x6e   :  { %978 = vmatpush3.msra.mxu1 %v1322_v13  ;;  %989 = vmatpush3.msra.mxu0 %v181_v24  ;;  %v55_v24 = vld [vmem:[#allocation2] sm:$0x3] }
  0x6f   :  { %979 = vmatprep.subr.mxu1 %v1153_v0  ;;  %990 = vmatprep.subr.mxu0 %v1153_v0 }
  0x70   :  { %980 = vmatpush3.msra.mxu1 %v1335_v32  ;;  %981 = vmatprep.mubr.msk.f32.mxu1 %vm1154_vm0, %v1153_v0 }
  0x71   :  { %991 = vmatpush3.msra.mxu0 %v188_v27  ;;  %982 = vmatmul.mubr.f32.vlgmr.msra.gmra.mxu1 %v156_v42  ;;  %v741_v27 = vld [vmem:[%s1567_s3] ss:$0 sm:$0xff] }
  0x72   :  { %992 = vmatprep.subr.mxu0 %v1153_v0  ;;  %1019 = vmatprep.subr.mxu1 %v1153_v0 }
  0x73   :  { %993 = vmatpush3.msra.mxu0 %v195_v29  ;;  %1020 = vmatpush3.msra.mxu1 %v1196_v4 }
  0x74   :  { %994 = vmatprep.subr.mxu0 %v1153_v0  ;;  %1021 = vmatprep.subr.mxu1 %v1153_v0 }
  0x75   :  { %995 = vmatpush3.msra.mxu0 %v202_v40  ;;  %1022 = vmatpush3.msra.mxu1 %v1198_v5 }
  0x76   :  { %996 = vmatprep.subr.mxu0 %v1153_v0  ;;  %1023 = vmatprep.subr.mxu1 %v1153_v0 }
  0x77   :  { %997 = vmatpush3.msra.mxu0 %v209_v46  ;;  %1024 = vmatpush3.msra.mxu1 %v1200_v6 }
  0x78   :  { %998 = vmatprep.subr.mxu0 %v1153_v0  ;;  %1025 = vmatprep.subr.mxu1 %v1153_v0 }
  0x79   :  { %999 = vmatpush3.msra.mxu0 %v216_v53  ;;  %1026 = vmatpush3.msra.mxu1 %v1202_v10 }
  0x7a   :  { %1000 = vmatprep.subr.mxu0 %v1153_v0  ;;  %1027 = vmatprep.subr.mxu1 %v1153_v0 }
  0x7b   :  { %1001 = vmatpush3.msra.mxu0 %v223_v57  ;;  %1028 = vmatpush3.msra.mxu1 %v1204_v11 }
  0x7c   :  { %1002 = vmatprep.subr.mxu0 %v1153_v0  ;;  %1029 = vmatprep.subr.mxu1 %v1153_v0 }
  0x7d   :  { %1003 = vmatpush3.msra.mxu0 %v230_v3  ;;  %1030 = vmatpush3.msra.mxu1 %v1206_v12 }
  0x7e   :  { %1004 = vmatprep.subr.mxu0 %v1153_v0  ;;  %1031 = vmatprep.subr.mxu1 %v1153_v0 }
  0x7f   :  { %1005 = vmatpush3.msra.mxu0 %v237_v19  ;;  %1032 = vmatpush3.msra.mxu1 %v1215_v17 }
  0x80   :  { %1006 = vmatprep.subr.mxu0 %v1153_v0  ;;  %1033 = vmatprep.subr.mxu1 %v1153_v0 }
  0x81   :  { %1007 = vmatpush3.msra.mxu0 %v244_v37  ;;  %1034 = vmatpush3.msra.mxu1 %v1231_v25 }
  0x82   :  { %1008 = vmatprep.subr.mxu0 %v1153_v0  ;;  %1035 = vmatprep.subr.mxu1 %v1153_v0 }
  0x83   :  { %1009 = vmatpush3.msra.mxu0 %v251_v44  ;;  %1036 = vmatpush3.msra.mxu1 %v1235_v28 }
  0x84   :  { %1010 = vmatprep.subr.mxu0 %v1153_v0  ;;  %1037 = vmatprep.subr.mxu1 %v1153_v0 }
  0x85   :  { %1011 = vmatpush3.msra.mxu0 %v258_v54  ;;  %1038 = vmatpush3.msra.mxu1 %v1255_v35 }
  0x86   :  { %1012 = vmatprep.subr.mxu0 %v1153_v0  ;;  %1039 = vmatprep.subr.mxu1 %v1153_v0 }
  0x87   :  { %1013 = vmatpush3.msra.mxu0 %v265_v2  ;;  %1040 = vmatpush3.msra.mxu1 %v1270_v45 }
  0x88   :  { %1014 = vmatprep.subr.mxu0 %v1153_v0  ;;  %1041 = vmatprep.subr.mxu1 %v1153_v0 }
  0x89   :  { %1015 = vmatpush3.msra.mxu0 %v272_v14  ;;  %1016 = vmatprep.mubr.msk.f32.mxu0 %vm1154_vm0, %v1153_v0 }
  0x8a   :  { %1042 = vmatpush3.msra.mxu1 %v1278_v48  ;;  %1017 = vmatmul.mubr.f32.vlgmr.msra.gmra.mxu0 %v1303_v62 }
  0x8b   :  { %1043 = vmatprep.subr.mxu1 %v1153_v0  ;;  %1051 = vmatprep.mubr.msk.f32.mxu1 %vm1154_vm0, %v1153_v0 }
  0x8c   :  { %1044 = vmatpush3.msra.mxu1 %v1297_v59 }
  0x8d   :  { %1045 = vmatprep.subr.mxu1 %v1153_v0 }
  0x8e   :  { %1046 = vmatpush3.msra.mxu1 %v1307_v63 }
  0x8f   :  { %1047 = vmatprep.subr.mxu1 %v1153_v0 }
  0x90   :  { %1048 = vmatpush3.msra.mxu1 %v1322_v13 }
  0x91   :  { %1049 = vmatprep.subr.mxu1 %v1153_v0 }
  0x92   :  { %1050 = vmatpush3.msra.mxu1 %v1335_v32 }
  0x93   :  { %1052 = vmatmul.mubr.f32.vlgmr.msra.gmra.mxu1 %v1303_v62 }
 0x108   :  { %v160_v4 = vpop.f32.mrf.mxu0 }
 0x10a   :  { %v878_v5 = vpop.f32.mrf.mxu0 }
 0x10f   :  { %v311_v6 = vpop.f32.mrf.mxu1 }
 0x110   :  { %v312_v18 = vadd.f32 %v311_v6, %v160_v4 }
 0x111   :  { %v913_v10 = vpop.f32.mrf.mxu1 }
 0x128   :  { %v415_v11 = vpop.f32.mrf.mxu0 }
 0x129   :  { %v416_v21 = vadd.f32 %v415_v11, %v312_v18 }
 0x12a   :  { %v948_v12 = vpop.f32.mrf.mxu0 }
 0x131   :  { %v504_v15 = vpop.f32.mrf.mxu1 }
 0x132   :  { %v505_v22 = vadd.f32 %v504_v15, %v416_v21 }
 0x133   :  { %v983_v16 = vpop.f32.mrf.mxu1 }
 0x14a   :  { %v623_v17 = vpop.f32.mrf.mxu0 }
 0x14b   :  { %v624_v23 = vadd.f32 %v623_v17, %v505_v22 }
 0x14c   :  { %v1018_v20 = vpop.f32.mrf.mxu0 }
 0x153   :  { %v710_v0 = vpop.f32.mrf.mxu1 }
 0x154   :  { %v711_v25 = vadd.f32 %v710_v0, %v624_v23 }
 0x155   :  { %v1053_v28 = vpop.f32.mrf.mxu1 }
 0x156   :  { %v714_v29 = vmul.f32 %v711_v25, %v55_v24 }
 0x158   :  { %v722_v30 = vadd.f32 %v741_v27, %v714_v29 }
 0x15a   :  { %v723_v34 = vadd.f32 %v722_v30, %v1280_v50 }
 0x15c   :  { %724 = vst [vmem:[#allocation8] sm:$0x3] %v723_v34 }
 0x15d   :  { %1133 = shalt.err (!%p1130_p5)
}
 0x15e   :  { %734 = dma.vmem_to_hbm [thread:$0]  %s732_s6, 32, %s1568_s4, [#allocation4]  }
 0x15f   :  { %1146 = dma.done.wait [#allocation4], 32  }
 0x160   :  { %1147 = vsyncadd [#allocation4], 4294967264 }
 0x161   :  { %738 = vsyncpa [#allocation3], 1 }
 0x162   :  { %739 = vsyncpa [#allocation6], 1 }
 0x163   :  { %740 = vsyncpa [#allocation4], 1 }

</bundles_post_ra>
